<compile_context>
chip_gen: v7x
topology: tpu7x:2x2x1
jax: 0.10.0
libtpu: 0.0.40
codegen_flags: <defaults>
</compile_context>

<pallas_src>
import jax
import jax.numpy as jnp
from jax.experimental import pallas as pl
from jax.experimental.pallas import tpu as pltpu


def _round_up(x, m):
    return ((x + m - 1) // m) * m


def critic_kernel(x_ref, w1_ref, b1_ref, w2_ref, b2_ref, w3_ref, b3_ref,
                  q_ref):
    """One batch tile: q(tb, 1) = l3(relu(l2(relu(l1(x)))))."""
    cdt = w1_ref.dtype  # compute dtype for MXU operands (bf16 or f32)

    # ---- layer 1: single fused K=(state_dim+action_dim) matmul ----
    h1 = jnp.dot(x_ref[...], w1_ref[...], preferred_element_type=jnp.float32)
    h1 = jnp.maximum(h1 + b1_ref[...], 0.0)           # bias + ReLU in f32 (VPU)

    # ---- layer 2 (dominant H x H matmul) ----
    h2 = jnp.dot(h1.astype(cdt), w2_ref[...],
                 preferred_element_type=jnp.float32)
    h2 = jnp.maximum(h2 + b2_ref[...], 0.0)

    # ---- layer 3: off the MXU.  VPU multiply + XLU lane reduce against the
    # resident (1, H) w3 row; avoids any transpose of the (tb, H) h2 block. ----
    q = jnp.sum(h2 * w3_ref[...].astype(jnp.float32), axis=-1, keepdims=True)
    q_ref[...] = q + b3_ref[0, 0]                     # scalar bias from SMEM


def critic_forward(s, a, params, *, block_b=1024, compute_dtype=jnp.bfloat16):
    """s: (B, state_dim), a: (B, action_dim) -> q: (B, 1) float32."""
    w1, b1, w2, b2, w3, b3 = params
    B, state_dim = s.shape
    action_dim = a.shape[1]
    in1 = state_dim + action_dim
    H = w2.shape[0]

    # ---- batch tile selection (dtype sublane pack aware, MXU-width aligned) --
    itemsize = jnp.dtype(compute_dtype).itemsize
    pack = 16 if jnp.dtype(compute_dtype) == jnp.dtype(jnp.bfloat16) else 8
    b_pack = _round_up(B, pack)
    if b_pack <= block_b:
        tb = b_pack                       # single tile, small batches
    else:
        tb = _round_up(block_b, 256)      # 256 fills v6e/v7x MXU; x2 of 128 (v5e)
    bp = _round_up(B, tb)
    nb = bp // tb

    # ---- pack [s | a] once in the wrapper (cheap B*in1 copy, fixes lane waste)
    x = jnp.concatenate([s, a], axis=1).astype(compute_dtype)
    if bp != B:
        x = jnp.pad(x, ((0, bp - B), (0, 0)))

    # MXU operands (activations + weights) in compute dtype; elementwise in f32.
    w1 = w1.astype(compute_dtype)
    w2 = w2.astype(compute_dtype)
    w3 = w3.astype(compute_dtype)         # (1, H) row, used on the VPU
    b1 = b1.astype(jnp.float32)
    b2 = b2.astype(jnp.float32)
    b3 = b3.astype(jnp.float32)

    def resident(shape):
        # Constant index_map -> fetched once, stays VMEM-resident over the grid.
        return pl.BlockSpec(shape, lambda i: (0, 0))

    in_specs = [
        pl.BlockSpec((tb, in1), lambda i: (i, 0)),          # packed [s|a] tile
        resident((in1, H)),                                 # w1 (merged)
        resident((1, H)),                                   # b1
        resident((H, H)),                                   # w2
        resident((1, H)),                                   # b2
        resident((1, H)),                                   # w3 row
        pl.BlockSpec(memory_space=pltpu.MemorySpace.SMEM),  # b3 scalar
    ]
    out_specs = pl.BlockSpec((tb, 1), lambda i: (i, 0))
    out_shape = jax.ShapeDtypeStruct((bp, 1), jnp.float32)

    # ---- scheduler hints + VMEM budget ----
    cost = pl.CostEstimate(
        flops=2 * bp * (in1 * H + H * H + H),
        transcendentals=0,
        bytes_accessed=(x.size + w1.size + w2.size + w3.size) * itemsize
        + (b1.size + b2.size + b3.size + bp) * 4,
    )
    # Rough working-set estimate: double-buffered x/q tiles, double-buffered
    # resident weights, f32 h1/h2 intermediates.
    vmem_est = (2 * tb * in1 * itemsize
                + 2 * (in1 * H + H * H + H) * itemsize
                + 4 * H * 4
                + 2 * tb * H * 4
                + 2 * tb * 4)
    cp_kwargs = dict(dimension_semantics=("parallel",))
    if vmem_est > 12 * 1024 * 1024:
        # Raise the scoped limit (v5e default ~16 MiB); cap at v7x physical.
        cp_kwargs["vmem_limit_bytes"] = min(int(vmem_est * 3 // 2), 64 << 20)

    q = pl.pallas_call(
        critic_kernel,
        grid=(nb,),
        in_specs=in_specs,
        out_specs=out_specs,
        out_shape=out_shape,
        compiler_params=pltpu.CompilerParams(**cp_kwargs),
        cost_estimate=cost,
    )(x, w1, b1, w2, b2, w3, b3)

    return q[:B]


def init_critic_params(key, state_dim, action_dim, hidden_width):
    """Deterministic init matching nn.Linear shapes (l1/l2 stored transposed)."""
    k1, k2, k3, k4, k5, k6 = jax.random.split(key, 6)
    in1 = state_dim + action_dim

    def uinit(k, shape, fan_in):
        bound = 1.0 / jnp.sqrt(fan_in)
        return jax.random.uniform(k, shape, jnp.float32, -bound, bound)

    w1 = uinit(k1, (in1, hidden_width), in1)                     # l1.weight.T
    b1 = uinit(k2, (1, hidden_width), in1)                       # l1.bias
    w2 = uinit(k3, (hidden_width, hidden_width), hidden_width)   # l2.weight.T
    b2 = uinit(k4, (1, hidden_width), hidden_width)              # l2.bias
    w3 = uinit(k5, (1, hidden_width), hidden_width)              # l3.weight
    b3 = uinit(k6, (1, 1), hidden_width)                         # l3.bias
    return (w1, b1, w2, b2, w3, b3)


def _reference(s, a, params):
    w1, b1, w2, b2, w3, b3 = params
    x = jnp.concatenate([s, a], axis=1)
    h = jnp.maximum(x @ w1 + b1, 0.0)
    h = jnp.maximum(h @ w2 + b2, 0.0)
    return h @ w3.T + b3


if __name__ == "__main__":
    key = jax.random.PRNGKey(0)
    k_s, k_a, k_p = jax.random.split(key, 3)

    batch, state_dim, action_dim, hidden_width = 8, 12, 4, 32
    s = jax.random.normal(k_s, (batch, state_dim), jnp.float32)
    a = jax.random.normal(k_a, (batch, action_dim), jnp.float32)
    params = init_critic_params(k_p, state_dim, action_dim, hidden_width)
    ref = _reference(s, a, params)

    # Default fast path: bf16 MXU operands, f32 accumulation + f32 bias/ReLU.
    q = critic_forward(s, a, params)
    jax.block_until_ready(q)
    assert q.shape == (batch, 1)
    assert jnp.allclose(q, ref, atol=1e-1, rtol=1e-1)

    # f32 operand path (tight tolerance).
    q_f32 = critic_forward(s, a, params, compute_dtype=jnp.float32)
    jax.block_until_ready(q_f32)
    assert q_f32.shape == (batch, 1)
    assert jnp.allclose(q_f32, ref, atol=1e-4, rtol=1e-4)

    # Larger, non-divisible batch exercises the tiled grid + padding path
    # (f32 so the multi-tile result can be checked tightly).
    k_s2, k_a2 = jax.random.split(jax.random.PRNGKey(1), 2)
    big_b = 1000
    s2 = jax.random.normal(k_s2, (big_b, state_dim), jnp.float32)
    a2 = jax.random.normal(k_a2, (big_b, action_dim), jnp.float32)
    q2 = critic_forward(s2, a2, params, block_b=256, compute_dtype=jnp.float32)
    jax.block_until_ready(q2)
    ref2 = _reference(s2, a2, params)
    assert q2.shape == (big_b, 1)
    assert jnp.allclose(q2, ref2, atol=1e-4, rtol=1e-4)

    # Same big batch on the default bf16 single-tile path.
    q3 = critic_forward(s2, a2, params)
    jax.block_until_ready(q3)
    assert q3.shape == (big_b, 1)
    assert jnp.allclose(q3, ref2, atol=1e-1, rtol=1e-1)

    print("KERNEL_OK")
</pallas_src>

<mosaic_0001>
module attributes {stable_mosaic.version = 11 : i64} {
  func.func @critic_kernel(%arg0: i32, %arg1: memref<16x16xbf16, #tpu.memory_space<vmem>>, %arg2: memref<16x32xbf16, #tpu.memory_space<vmem>>, %arg3: memref<1x32xf32, #tpu.memory_space<vmem>>, %arg4: memref<32x32xbf16, #tpu.memory_space<vmem>>, %arg5: memref<1x32xf32, #tpu.memory_space<vmem>>, %arg6: memref<1x32xbf16, #tpu.memory_space<vmem>>, %arg7: memref<1x1xf32, #tpu.memory_space<smem>>, %arg8: memref<16x1xf32, #tpu.memory_space<vmem>>) attributes {dimension_semantics = [#tpu.dimension_semantics<parallel>], iteration_bounds = array<i64: 1>, scalar_prefetch = 0 : i64, scratch_operands = 0 : i64, tpu.core_type = #tpu.core_type<tc>, window_params = [{transform_indices = @transform_0, window_bounds = array<i64: 16, 16>}, {pipeline_mode = #tpu.pipeline_mode<synchronous>, transform_indices = @transform_1, window_bounds = array<i64: 16, 32>}, {pipeline_mode = #tpu.pipeline_mode<synchronous>, transform_indices = @transform_2, window_bounds = array<i64: 1, 32>}, {pipeline_mode = #tpu.pipeline_mode<synchronous>, transform_indices = @transform_3, window_bounds = array<i64: 32, 32>}, {pipeline_mode = #tpu.pipeline_mode<synchronous>, transform_indices = @transform_4, window_bounds = array<i64: 1, 32>}, {pipeline_mode = #tpu.pipeline_mode<synchronous>, transform_indices = @transform_5, window_bounds = array<i64: 1, 32>}, {transform_indices = @transform_6, window_bounds = array<i64: 1, 1>}, {transform_indices = @transform_7, window_bounds = array<i64: 16, 1>}]} {
    %c0 = arith.constant 0 : index
    %c0_0 = arith.constant 0 : index
    %0 = vector.load %arg1[%c0, %c0_0] : memref<16x16xbf16, #tpu.memory_space<vmem>>, vector<16x16xbf16>
    %c0_1 = arith.constant 0 : index
    %c0_2 = arith.constant 0 : index
    %1 = vector.load %arg2[%c0_1, %c0_2] : memref<16x32xbf16, #tpu.memory_space<vmem>>, vector<16x32xbf16>
    %cst = arith.constant dense<0.000000e+00> : vector<16x32xf32>
    %2 = tpu.matmul %0, %1, %cst {dimension_numbers = #tpu.dot_dimension_numbers<[1], [0], [0], [1], [0, 0, 1, 1], [], []>} : vector<16x16xbf16>, vector<16x32xbf16>, vector<16x32xf32> -> vector<16x32xf32>
    %c0_3 = arith.constant 0 : index
    %c0_4 = arith.constant 0 : index
    %3 = vector.load %arg3[%c0_3, %c0_4] : memref<1x32xf32, #tpu.memory_space<vmem>>, vector<1x32xf32>
    %4 = vector.broadcast %3 : vector<1x32xf32> to vector<16x32xf32>
    %5 = arith.addf %2, %4 : vector<16x32xf32>
    %cst_5 = arith.constant 0.000000e+00 : f32
    %6 = vector.broadcast %cst_5 : f32 to vector<16x32xf32>
    %7 = arith.maximumf %5, %6 : vector<16x32xf32>
    %8 = arith.truncf %7 : vector<16x32xf32> to vector<16x32xbf16>
    %c0_6 = arith.constant 0 : index
    %c0_7 = arith.constant 0 : index
    %9 = vector.load %arg4[%c0_6, %c0_7] : memref<32x32xbf16, #tpu.memory_space<vmem>>, vector<32x32xbf16>
    %cst_8 = arith.constant dense<0.000000e+00> : vector<16x32xf32>
    %10 = tpu.matmul %8, %9, %cst_8 {dimension_numbers = #tpu.dot_dimension_numbers<[1], [0], [0], [1], [0, 0, 1, 1], [], []>} : vector<16x32xbf16>, vector<32x32xbf16>, vector<16x32xf32> -> vector<16x32xf32>
    %c0_9 = arith.constant 0 : index
    %c0_10 = arith.constant 0 : index
    %11 = vector.load %arg5[%c0_9, %c0_10] : memref<1x32xf32, #tpu.memory_space<vmem>>, vector<1x32xf32>
    %12 = vector.broadcast %11 : vector<1x32xf32> to vector<16x32xf32>
    %13 = arith.addf %10, %12 : vector<16x32xf32>
    %cst_11 = arith.constant 0.000000e+00 : f32
    %14 = vector.broadcast %cst_11 : f32 to vector<16x32xf32>
    %15 = arith.maximumf %13, %14 : vector<16x32xf32>
    %c0_12 = arith.constant 0 : index
    %c0_13 = arith.constant 0 : index
    %16 = vector.load %arg6[%c0_12, %c0_13] : memref<1x32xbf16, #tpu.memory_space<vmem>>, vector<1x32xbf16>
    %17 = arith.extf %16 : vector<1x32xbf16> to vector<1x32xf32>
    %18 = vector.broadcast %17 : vector<1x32xf32> to vector<16x32xf32>
    %19 = arith.mulf %15, %18 : vector<16x32xf32>
    %cst_14 = arith.constant dense<0.000000e+00> : vector<16xf32>
    %20 = vector.multi_reduction <add>, %19, %cst_14 [1] : vector<16x32xf32> to vector<16xf32>
    %21 = vector.shape_cast %20 : vector<16xf32> to vector<16x1xf32>
    %c0_15 = arith.constant 0 : index
    %c0_16 = arith.constant 0 : index
    %22 = memref.load %arg7[%c0_15, %c0_16] : memref<1x1xf32, #tpu.memory_space<smem>>
    %23 = vector.broadcast %22 : f32 to vector<16x1xf32>
    %24 = arith.addf %21, %23 : vector<16x1xf32>
    %c0_17 = arith.constant 0 : index
    %c0_18 = arith.constant 0 : index
    %25 = vector.load %arg8[%c0_17, %c0_18] : memref<16x1xf32, #tpu.memory_space<vmem>>, vector<16x1xf32>
    tpu.vector_store %arg8[%c0_17, %c0_18], %24 {strides = array<i32>} : memref<16x1xf32, #tpu.memory_space<vmem>>, vector<16x1xf32>,
    return
  }
  func.func @transform_0(%arg0: i32) -> (i32, i32) {
    %c0_i32 = arith.constant 0 : i32
    %c0_i32_0 = arith.constant 0 : i32
    return %arg0, %c0_i32 : i32, i32
  }
  func.func @transform_1(%arg0: i32) -> (i32, i32) {
    %c0_i32 = arith.constant 0 : i32
    %c0_i32_0 = arith.constant 0 : i32
    %c0_i32_1 = arith.constant 0 : i32
    return %c0_i32, %c0_i32_0 : i32, i32
  }
  func.func @transform_2(%arg0: i32) -> (i32, i32) {
    %c0_i32 = arith.constant 0 : i32
    %c0_i32_0 = arith.constant 0 : i32
    %c0_i32_1 = arith.constant 0 : i32
    return %c0_i32, %c0_i32_0 : i32, i32
  }
  func.func @transform_3(%arg0: i32) -> (i32, i32) {
    %c0_i32 = arith.constant 0 : i32
    %c0_i32_0 = arith.constant 0 : i32
    %c0_i32_1 = arith.constant 0 : i32
    return %c0_i32, %c0_i32_0 : i32, i32
  }
  func.func @transform_4(%arg0: i32) -> (i32, i32) {
    %c0_i32 = arith.constant 0 : i32
    %c0_i32_0 = arith.constant 0 : i32
    %c0_i32_1 = arith.constant 0 : i32
    return %c0_i32, %c0_i32_0 : i32, i32
  }
  func.func @transform_5(%arg0: i32) -> (i32, i32) {
    %c0_i32 = arith.constant 0 : i32
    %c0_i32_0 = arith.constant 0 : i32
    %c0_i32_1 = arith.constant 0 : i32
    return %c0_i32, %c0_i32_0 : i32, i32
  }
  func.func @transform_6(%arg0: i32) -> (i32, i32) {
    %c0_i32 = arith.constant 0 : i32
    %c0_i32_0 = arith.constant 0 : i32
    %c0_i32_1 = arith.constant 0 : i32
    return %c0_i32, %c0_i32_0 : i32, i32
  }
  func.func @transform_7(%arg0: i32) -> (i32, i32) {
    %c0_i32 = arith.constant 0 : i32
    %c0_i32_0 = arith.constant 0 : i32
    return %arg0, %c0_i32 : i32, i32
  }
}

</mosaic_0001>

<bundles_post_ra>
// kernel: tpu_custom_call.1
= control target key start
LH: loop header
LB: loop body
LE: loop exit
PB: predicated region body
PF: predicated region fallthrough
CT: control target
= control target key end

     0   :  { %13 = vsyncpa [#allocation4], 0  ;;  %s464_s0 = inlined_call_operand.hbm [shape: bf16[16,16], index: 0, kind: input, shape index: {}]   ;;  %s465_s1 = inlined_call_operand.hbm [shape: bf16[16,32], index: 1, kind: input, shape index: {}]   ;;  %s466_s2 = inlined_call_operand.vmem [shape: f32[1,32], index: 2, kind: input, shape index: {}]   ;;  %s467_s3 = inlined_call_operand.hbm [shape: bf16[32,32], index: 3, kind: input, shape index: {}]   ;;  %s468_s4 = inlined_call_operand.vmem [shape: f32[1,32], index: 4, kind: input, shape index: {}]   ;;  %s469_s5 = inlined_call_operand.vmem [shape: bf16[1,32], index: 5, kind: input, shape index: {}]   ;;  %s470_s6 = inlined_call_operand.<no memory space> [shape: f32[1,1], index: 6, kind: input, shape index: {}]   ;;  %s471_s7 = inlined_call_operand.vmem [shape: f32[16,1], index: 7, kind: output, shape index: {}]  }
   0x1   :  { %14 = vsyncpa [#allocation6], 0  ;;  %s344_s24 = smov [#allocation5]   ;;  %s345_s26 = smov [#allocation3]  }
   0x2   :  { %s32_s25 = sshll.u32 %s344_s24, 4  ;;  %s20_s27 = sshll.u32 %s345_s26, 4  ;;  %s33_s25 = int_to_ptr.vmem [resolvable:$true] %s32_s25  ;;  %s391_s27 = int_to_ptr.vmem [resolvable:$true] %s20_s27 }
   0x3   :  { %s274_s30 = scalar_lea.hbm %s465_s1, 128 }
   0x4   :  { %p275_p0 = scmp.ne.s32.totalorder %s465_s1, %s274_s30  ;;  %p278_p1 = scmp.lt.u32.totalorder %s274_s30, %s465_s1 }
   0x6   :  { %p280_p2 = pnand %p278_p1, %p275_p0 }
   0x8   :  { %283 = shalt.err (!%p280_p2)
}
   0x9   :  { %s284_s12 = scalar_lea.vmem %s33_s25, 128  ;;  %p289_p4 = scmp.lt.s32.totalorder %s33_s25, %s33_s25 }
   0xa   :  { %p285_p3 = scmp.ne.s32.totalorder %s33_s25, %s284_s12  ;;  %p290_p5 = scmp.lt.s32.totalorder %s284_s12, %s284_s12 }
   0xc   :  { %p291_p6 = por %p290_p5, %p289_p4 }
   0xe   :  { %p292_p7 = pnand %p291_p6, %p285_p3 }
  0x10   :  { %295 = shalt.err (!%p292_p7)
}
  0x11   :  { %s346_s13 = smov 64   ;;  %s347_s14 = smov 4  }
  0x12   :  { %38 = dma.hbm_to_vmem [thread:$0]  %s465_s1, 128, %s33_s25, [#allocation6], %s346_s13, %s346_s13, %s347_s14  }
  0x13   :  { %s296_s19 = scalar_lea.hbm %s464_s0, 128 }
  0x14   :  { %p297_p8 = scmp.ne.s32.totalorder %s464_s0, %s296_s19  ;;  %p300_p9 = scmp.lt.u32.totalorder %s296_s19, %s464_s0 }
  0x16   :  { %p302_p10 = pnand %p300_p9, %p297_p8 }
  0x18   :  { %305 = shalt.err (!%p302_p10)
}
  0x19   :  { %s306_s24 = scalar_lea.vmem %s391_s27, 128  ;;  %p311_p12 = scmp.lt.s32.totalorder %s391_s27, %s391_s27 }
  0x1a   :  { %p307_p11 = scmp.ne.s32.totalorder %s391_s27, %s306_s24  ;;  %p312_p13 = scmp.lt.s32.totalorder %s306_s24, %s306_s24 }
  0x1c   :  { %p313_p0 = por %p312_p13, %p311_p12 }
  0x1e   :  { %p314_p1 = pnand %p313_p0, %p307_p11 }
  0x20   :  { %317 = shalt.err (!%p314_p1)
}
  0x21   :  { %26 = dma.hbm_to_vmem [thread:$0]  %s464_s0, 128, %s391_s27, [#allocation4], %s346_s13, %s346_s13, %s347_s14  }
  0x22   :  { %s348_s26 = smov [#allocation7]   ;;  %s318_s8 = scalar_lea.hbm %s467_s3, 256 }
  0x23   :  { %s46_s28 = sshll.u32 %s348_s26, 4  ;;  %p319_p2 = scmp.ne.s32.totalorder %s467_s3, %s318_s8  ;;  %s47_s28 = int_to_ptr.vmem [resolvable:$true] %s46_s28 }
  0x24   :  { %p322_p3 = scmp.lt.u32.totalorder %s318_s8, %s467_s3 }
  0x26   :  { %p324_p4 = pnand %p322_p3, %p319_p2 }
  0x28   :  { %327 = shalt.err (!%p324_p4)
}
  0x29   :  { %s328_s15 = scalar_lea.vmem %s47_s28, 256  ;;  %p333_p6 = scmp.lt.s32.totalorder %s47_s28, %s47_s28 }
  0x2a   :  { %p329_p5 = scmp.ne.s32.totalorder %s47_s28, %s328_s15  ;;  %p334_p7 = scmp.lt.s32.totalorder %s328_s15, %s328_s15 }
  0x2c   :  { %p335_p8 = por %p334_p7, %p333_p6 }
  0x2e   :  { %p336_p9 = pnand %p335_p8, %p329_p5 }
  0x30   :  { %339 = shalt.err (!%p336_p9)
}
  0x31   :  { %52 = dma.hbm_to_vmem [thread:$0]  %s467_s3, 256, %s47_s28, [#allocation6], %s346_s13, %s346_s13, %s347_s14  }
  0x32   :  { %340 = dma.done.wait [#allocation4], 128  }
  0x33   :  { %341 = vsyncadd [#allocation4], 4294967168 }
  0x34   :  { %342 = dma.done.wait [#allocation6], 384  }
  0x35   :  { %343 = vsyncadd [#allocation6], 4294966912  ;;  %v349_v0 = vmov 0.0   ;;  %vm350_vm0 = vmmov 0   ;;  %v270_v1 = vld [vmem:[#allocation5] sm:$0xff]   ;;  %v271_v2 = vld [vmem:[#allocation3] sm:$0xff]   ;;  %v211_v15 = vlaneseq  ;;  %v224_v34 = vstv %s470_s6 }
  0x36   :  { %249 = vmatprep.subr.bf16.mxu0 %v349_v0  ;;  %251 = vmatprep.mubr.msk.bf16.mxu0 %vm350_vm0, %v349_v0  ;;  %vm91_vm1 = vcmask 130048   ;;  %v272_v3 = vld [vmem:[#allocation7] sm:$0xff]   ;;  %v273_v4 = vld [vmem:[#allocation7 + $0x8] sm:$0xff]   ;;  %v236_v5 = vld [vmem:[%s466_s2] ss:$0 sm:$0xff]  ;;  %vm162_vm2 = vcmask 261120  }
  0x37   :  { %255 = vmatprep.subr.bf16.mxu1 %v349_v0  ;;  %259 = vmatprep.mubr.msk.bf16.mxu1 %vm350_vm0, %v349_v0  ;;  %v212_v16 = vshrl.u32 %v211_v15, 7  ;;  %v209_v17 = vld [vmem:[%s469_s5] sm:$0x1]  ;;  %vm227_vm3 = vcmask 7168  }
  0x38   :  { %250 = vmatpush3.bf16.msra.mxu0 %v270_v1  ;;  %256 = vmatpush3.bf16.msra.mxu1 %v272_v3  ;;  %v210_v18 = vunpack.c.l.bf16 %v209_v17  ;;  %v240_v20 = vld [vmem:[%s468_s4] ss:$0 sm:$0xff] }
  0x39   :  { %257 = vmatprep.subr.bf16.mxu1 %v349_v0  ;;  %v213_v19 = vsub.s32 0, %v212_v16 }
  0x3b   :  { %252 = vmatmul.mubr.msk.bf16.vlgmr.msra.gmra.mrb[0].mxu0 %vm91_vm1, %v271_v2  ;;  %v214_v24 = vrot.slane %v210_v18, %v213_v19 }
  0x3c   :  { %258 = vmatpush3.bf16.msra.mxu1 %v273_v4 }
 0x10e   :  { %v129_v6 = vpop.f32.mrb[0].mxu0 }
 0x10f   :  { %v130_v7 = vadd.f32 %v236_v5, %v129_v6  ;;  %v253_v8 = vpop.f32.mrb[1].mxu0 }
 0x110   :  { %v132_v9 = vpop.f32.mrb[2].mxu0 }
 0x111   :  { %v133_v10 = vadd.f32 %v236_v5, %v132_v9  ;;  %v254_v11 = vpop.f32.mrb[3].mxu0  ;;  %v136_v12 = vmax.f32 %v130_v7, 0.0 }
 0x113   :  { %v137_v13 = vmax.f32 %v133_v10, 0.0 }
 0x115   :  { %v138_v14 = vpack.c.bf16 %v137_v13, %v136_v12 }
 0x117   :  { %260 = vmatmul.mubr.msk.bf16.vlgmr.msra.gmra.mrb[0].mxu1 %vm162_vm2, %v138_v14 }
 0x1ea   :  { %v200_v21 = vpop.f32.mrb[0].mxu1 }
 0x1eb   :  { %v201_v22 = vadd.f32 %v240_v20, %v200_v21  ;;  %v261_v23 = vpop.f32.mrb[1].mxu1 }
 0x1ec   :  { %v203_v25 = vpop.f32.mrb[2].mxu1 }
 0x1ed   :  { %v207_v26 = vmax.f32 %v201_v22, 0.0  ;;  %v204_v27 = vadd.f32 %v240_v20, %v203_v25  ;;  %v262_v28 = vpop.f32.mrb[3].mxu1 }
 0x1ef   :  { %v208_v29 = vmax.f32 %v204_v27, 0.0  ;;  %v215_v30 = vmul.f32 %v214_v24, %v207_v26 }
 0x1f1   :  { %v217_v31 = vsel %vm162_vm2, %v215_v30, 0.0  ;;  %v216_v32 = vmul.f32 %v214_v24, %v208_v29 }
 0x1f2   :  { %218 = vadd.xlane.f32.xlu0 %v217_v31 }
 0x1f3   :  { %v220_v33 = vsel %vm162_vm2, %v216_v32, 0.0 }
 0x1f6   :  { %221 = vadd.xlane.f32.xlu0 %v220_v33 }
 0x27f   :  { %v219_v35 = vpop.xlane.xlu0 %218 }
 0x280   :  { %v225_v36 = vadd.f32 %v224_v34, %v219_v35 }
 0x282   :  { %228 = vst.msk [vmem:[%s471_s7] sm:$0xff] %vm227_vm3, %v225_v36 }
 0x283   :  { %v222_v37 = vpop.xlane.xlu0 %221 }
 0x284   :  { %v226_v38 = vadd.f32 %v224_v34, %v222_v37 }
 0x286   :  { %229 = vst.msk [vmem:[%s471_s7 + $0x8] sm:$0xff] %vm227_vm3, %v226_v38 }
 0x287   :  { %234 = vsyncpa [#allocation4], 1 }
 0x288   :  { %235 = vsyncpa [#allocation6], 1 }

</bundles_post_ra>
